<compile_context>
chip_gen: v7x
topology: tpu7x:2x2x1
jax: 0.10.0
libtpu: 0.0.40
codegen_flags: <defaults>
</compile_context>

<pallas_src>
import functools

import jax
import jax.numpy as jnp
from jax.experimental import pallas as pl
from jax.experimental.pallas import tpu as pltpu


def _leaky_relu(v, slope):
    return jnp.where(v >= 0, v, slope * v)


def mlp_kernel(x_ref,
               w1_ref, b1_ref,
               w2_ref, b2_ref,
               w3_ref, b3_ref,
               w4_ref, b4_ref,
               o_ref):
    # x_ref: [2, bb] (batch on lanes). All intermediates are [feat, bb].
    x0 = x_ref[0:1, :]                      # [1, bb]
    x1 = x_ref[1:2, :]                      # [1, bb]

    # lin1 (in=2): K=2 contraction as VPU broadcast-FMA -> no MXU round-trip.
    h = w1_ref[:, 0:1] * x0 + w1_ref[:, 1:2] * x1 + b1_ref[...]      # [16, bb]
    h = _leaky_relu(h, 0.1)

    # lin2 (16 -> 64): MXU matmul, f32 accumulation.
    h = jnp.dot(w2_ref[...], h, preferred_element_type=jnp.float32) + b2_ref[...]
    h = _leaky_relu(h, 0.2)                                          # [64, bb]

    # lin3 (64 -> 8): MXU matmul.
    h = jnp.dot(w3_ref[...], h, preferred_element_type=jnp.float32) + b3_ref[...]
    h = _leaky_relu(h, 0.1)                                          # [8, bb]

    # lin4 (8 -> 1): weighted row-sum on VPU/XLU instead of an N=1 matmul.
    out = jnp.sum(w4_ref[...] * h, axis=0, keepdims=True) + b4_ref[...]   # [1, bb]
    o_ref[...] = out.astype(o_ref.dtype)


@functools.partial(jax.jit, static_argnames=("block_b",))
def nonlinear_forward(x, params, block_b=2048):
    """x: [B, 2] float32.  params in PyTorch layout (w: [out,in], b: [out])."""
    B = x.shape[0]
    assert block_b % 128 == 0, "block_b must be a multiple of 128 lanes"

    # Effective batch tile: multiple of 128, no larger than (padded) B.
    bb = min(block_b, ((B + 127) // 128) * 128)
    B_pad = pl.cdiv(B, bb) * bb

    # Pad the batch in the wrapper (cheap XLA op), then batch -> lane axis.
    xp = jnp.pad(x, ((0, B_pad - B), (0, 0))) if B_pad != B else x
    x_t = xp.T                                            # [2, B_pad]

    w1, b1 = params["w1"], params["b1"].reshape(-1, 1)    # [16,2],  [16,1]
    w2, b2 = params["w2"], params["b2"].reshape(-1, 1)    # [64,16], [64,1]
    w3, b3 = params["w3"], params["b3"].reshape(-1, 1)    # [8,64],  [8,1]
    w4 = params["w4"].T                                   # [8,1]
    b4 = params["b4"].reshape(1, 1)                       # [1,1]

    grid = (B_pad // bb,)

    def rep(a):   # small params: replicated full-array block at every step
        return pl.BlockSpec(a.shape, lambda i: (0, 0))

    out_t = pl.pallas_call(
        mlp_kernel,
        out_shape=jax.ShapeDtypeStruct((1, B_pad), x.dtype),
        grid=grid,
        in_specs=[
            pl.BlockSpec((2, bb), lambda i: (0, i)),      # x tile (lane-dense)
            rep(w1), rep(b1),
            rep(w2), rep(b2),
            rep(w3), rep(b3),
            rep(w4), rep(b4),
        ],
        out_specs=pl.BlockSpec((1, bb), lambda i: (0, i)),  # lane-dense output
        compiler_params=pltpu.CompilerParams(
            dimension_semantics=("parallel",)),
    )(x_t, w1, b1, w2, b2, w3, b3, w4, b4)

    return out_t.T[:B, :]                                 # [B, 1]


def init_params(key):
    """PyTorch-Linear-style init: uniform ±1/sqrt(fan_in), w: [out,in], b: [out]."""
    dims = [(2, 16), (16, 64), (64, 8), (8, 1)]
    params = {}
    for idx, (fan_in, fan_out) in enumerate(dims, start=1):
        key, kw, kb = jax.random.split(key, 3)
        bound = 1.0 / jnp.sqrt(jnp.float32(fan_in))
        params[f"w{idx}"] = jax.random.uniform(
            kw, (fan_out, fan_in), jnp.float32, -bound, bound)
        params[f"b{idx}"] = jax.random.uniform(
            kb, (fan_out,), jnp.float32, -bound, bound)
    return params


def reference_forward(x, params):
    """Pure-JAX reference matching the PyTorch forward semantics."""
    h = _leaky_relu(x @ params["w1"].T + params["b1"], 0.1)
    h = _leaky_relu(h @ params["w2"].T + params["b2"], 0.2)
    h = _leaky_relu(h @ params["w3"].T + params["b3"], 0.1)
    return h @ params["w4"].T + params["b4"]


if __name__ == "__main__":
    key = jax.random.PRNGKey(0)
    key, kx = jax.random.split(key)

    B = 200   # deliberately NOT a multiple of the tile -> exercises padding path
    x = jax.random.normal(kx, (B, 2), jnp.float32)
    params = init_params(key)

    out = nonlinear_forward(x, params)
    out = jax.block_until_ready(out)

    ref = reference_forward(x, params)
    assert out.shape == (B, 1)
    assert jnp.allclose(out, ref, atol=1e-4, rtol=1e-4), "mismatch vs reference"

    print("KERNEL_OK")
</pallas_src>

<mosaic_0001>
module attributes {stable_mosaic.version = 11 : i64} {
  func.func @mlp_kernel(%arg0: i32, %arg1: memref<2x256xf32, #tpu.memory_space<vmem>>, %arg2: memref<16x2xf32, #tpu.memory_space<vmem>>, %arg3: memref<16x1xf32, #tpu.memory_space<vmem>>, %arg4: memref<64x16xf32, #tpu.memory_space<vmem>>, %arg5: memref<64x1xf32, #tpu.memory_space<vmem>>, %arg6: memref<8x64xf32, #tpu.memory_space<vmem>>, %arg7: memref<8x1xf32, #tpu.memory_space<vmem>>, %arg8: memref<8x1xf32, #tpu.memory_space<vmem>>, %arg9: memref<1x1xf32, #tpu.memory_space<vmem>>, %arg10: memref<1x256xf32, #tpu.memory_space<vmem>>) attributes {dimension_semantics = [#tpu.dimension_semantics<parallel>], iteration_bounds = array<i64: 1>, scalar_prefetch = 0 : i64, scratch_operands = 0 : i64, tpu.core_type = #tpu.core_type<tc>, window_params = [{transform_indices = @transform_0, window_bounds = array<i64: 2, 256>}, {pipeline_mode = #tpu.pipeline_mode<synchronous>, transform_indices = @transform_1, window_bounds = array<i64: 16, 2>}, {pipeline_mode = #tpu.pipeline_mode<synchronous>, transform_indices = @transform_2, window_bounds = array<i64: 16, 1>}, {pipeline_mode = #tpu.pipeline_mode<synchronous>, transform_indices = @transform_3, window_bounds = array<i64: 64, 16>}, {pipeline_mode = #tpu.pipeline_mode<synchronous>, transform_indices = @transform_4, window_bounds = array<i64: 64, 1>}, {pipeline_mode = #tpu.pipeline_mode<synchronous>, transform_indices = @transform_5, window_bounds = array<i64: 8, 64>}, {pipeline_mode = #tpu.pipeline_mode<synchronous>, transform_indices = @transform_6, window_bounds = array<i64: 8, 1>}, {pipeline_mode = #tpu.pipeline_mode<synchronous>, transform_indices = @transform_7, window_bounds = array<i64: 8, 1>}, {pipeline_mode = #tpu.pipeline_mode<synchronous>, transform_indices = @transform_8, window_bounds = array<i64: 1, 1>}, {transform_indices = @transform_9, window_bounds = array<i64: 1, 256>}]} {
    %c0 = arith.constant 0 : index
    %c0_0 = arith.constant 0 : index
    %0 = vector.load %arg1[%c0, %c0_0] : memref<2x256xf32, #tpu.memory_space<vmem>>, vector<1x256xf32>
    %c1 = arith.constant 1 : index
    %c0_1 = arith.constant 0 : index
    %1 = vector.load %arg1[%c1, %c0_1] : memref<2x256xf32, #tpu.memory_space<vmem>>, vector<1x256xf32>
    %c0_2 = arith.constant 0 : index
    %c0_3 = arith.constant 0 : index
    %2 = vector.load %arg2[%c0_2, %c0_3] : memref<16x2xf32, #tpu.memory_space<vmem>>, vector<16x1xf32>
    %3 = vector.broadcast %2 : vector<16x1xf32> to vector<16x256xf32>
    %4 = vector.broadcast %0 : vector<1x256xf32> to vector<16x256xf32>
    %5 = arith.mulf %3, %4 : vector<16x256xf32>
    %c0_4 = arith.constant 0 : index
    %c1_5 = arith.constant 1 : index
    %6 = vector.load %arg2[%c0_4, %c1_5] : memref<16x2xf32, #tpu.memory_space<vmem>>, vector<16x1xf32>
    %7 = vector.broadcast %6 : vector<16x1xf32> to vector<16x256xf32>
    %8 = vector.broadcast %1 : vector<1x256xf32> to vector<16x256xf32>
    %9 = arith.mulf %7, %8 : vector<16x256xf32>
    %10 = arith.addf %5, %9 : vector<16x256xf32>
    %c0_6 = arith.constant 0 : index
    %c0_7 = arith.constant 0 : index
    %11 = vector.load %arg3[%c0_6, %c0_7] : memref<16x1xf32, #tpu.memory_space<vmem>>, vector<16x1xf32>
    %12 = vector.broadcast %11 : vector<16x1xf32> to vector<16x256xf32>
    %13 = arith.addf %10, %12 : vector<16x256xf32>
    %cst = arith.constant 0.000000e+00 : f32
    %14 = vector.broadcast %cst : f32 to vector<16x256xf32>
    %15 = arith.cmpf oge, %13, %14 : vector<16x256xf32>
    %cst_8 = arith.constant 1.000000e-01 : f32
    %16 = vector.broadcast %cst_8 : f32 to vector<16x256xf32>
    %17 = arith.mulf %16, %13 : vector<16x256xf32>
    %18 = arith.select %15, %13, %17 : vector<16x256xi1>, vector<16x256xf32>
    %c0_9 = arith.constant 0 : index
    %c0_10 = arith.constant 0 : index
    %19 = vector.load %arg4[%c0_9, %c0_10] : memref<64x16xf32, #tpu.memory_space<vmem>>, vector<64x16xf32>
    %cst_11 = arith.constant dense<0.000000e+00> : vector<64x256xf32>
    %20 = tpu.matmul %19, %18, %cst_11 {dimension_numbers = #tpu.dot_dimension_numbers<[1], [0], [0], [1], [0, 0, 1, 1], [], []>} : vector<64x16xf32>, vector<16x256xf32>, vector<64x256xf32> -> vector<64x256xf32>
    %c0_12 = arith.constant 0 : index
    %c0_13 = arith.constant 0 : index
    %21 = vector.load %arg5[%c0_12, %c0_13] : memref<64x1xf32, #tpu.memory_space<vmem>>, vector<64x1xf32>
    %22 = vector.broadcast %21 : vector<64x1xf32> to vector<64x256xf32>
    %23 = arith.addf %20, %22 : vector<64x256xf32>
    %cst_14 = arith.constant 0.000000e+00 : f32
    %24 = vector.broadcast %cst_14 : f32 to vector<64x256xf32>
    %25 = arith.cmpf oge, %23, %24 : vector<64x256xf32>
    %cst_15 = arith.constant 2.000000e-01 : f32
    %26 = vector.broadcast %cst_15 : f32 to vector<64x256xf32>
    %27 = arith.mulf %26, %23 : vector<64x256xf32>
    %28 = arith.select %25, %23, %27 : vector<64x256xi1>, vector<64x256xf32>
    %c0_16 = arith.constant 0 : index
    %c0_17 = arith.constant 0 : index
    %29 = vector.load %arg6[%c0_16, %c0_17] : memref<8x64xf32, #tpu.memory_space<vmem>>, vector<8x64xf32>
    %cst_18 = arith.constant dense<0.000000e+00> : vector<8x256xf32>
    %30 = tpu.matmul %29, %28, %cst_18 {dimension_numbers = #tpu.dot_dimension_numbers<[1], [0], [0], [1], [0, 0, 1, 1], [], []>} : vector<8x64xf32>, vector<64x256xf32>, vector<8x256xf32> -> vector<8x256xf32>
    %c0_19 = arith.constant 0 : index
    %c0_20 = arith.constant 0 : index
    %31 = vector.load %arg7[%c0_19, %c0_20] : memref<8x1xf32, #tpu.memory_space<vmem>>, vector<8x1xf32>
    %32 = vector.broadcast %31 : vector<8x1xf32> to vector<8x256xf32>
    %33 = arith.addf %30, %32 : vector<8x256xf32>
    %cst_21 = arith.constant 0.000000e+00 : f32
    %34 = vector.broadcast %cst_21 : f32 to vector<8x256xf32>
    %35 = arith.cmpf oge, %33, %34 : vector<8x256xf32>
    %cst_22 = arith.constant 1.000000e-01 : f32
    %36 = vector.broadcast %cst_22 : f32 to vector<8x256xf32>
    %37 = arith.mulf %36, %33 : vector<8x256xf32>
    %38 = arith.select %35, %33, %37 : vector<8x256xi1>, vector<8x256xf32>
    %c0_23 = arith.constant 0 : index
    %c0_24 = arith.constant 0 : index
    %39 = vector.load %arg8[%c0_23, %c0_24] : memref<8x1xf32, #tpu.memory_space<vmem>>, vector<8x1xf32>
    %40 = vector.broadcast %39 : vector<8x1xf32> to vector<8x256xf32>
    %41 = arith.mulf %40, %38 : vector<8x256xf32>
    %cst_25 = arith.constant dense<0.000000e+00> : vector<256xf32>
    %42 = vector.multi_reduction <add>, %41, %cst_25 [0] : vector<8x256xf32> to vector<256xf32>
    %43 = vector.shape_cast %42 : vector<256xf32> to vector<1x256xf32>
    %c0_26 = arith.constant 0 : index
    %c0_27 = arith.constant 0 : index
    %44 = vector.load %arg9[%c0_26, %c0_27] : memref<1x1xf32, #tpu.memory_space<vmem>>, vector<1x1xf32>
    %45 = vector.broadcast %44 : vector<1x1xf32> to vector<1x256xf32>
    %46 = arith.addf %43, %45 : vector<1x256xf32>
    %c0_28 = arith.constant 0 : index
    %c0_29 = arith.constant 0 : index
    %47 = vector.load %arg10[%c0_28, %c0_29] : memref<1x256xf32, #tpu.memory_space<vmem>>, vector<1x256xf32>
    tpu.vector_store %arg10[%c0_28, %c0_29], %46 {strides = array<i32>} : memref<1x256xf32, #tpu.memory_space<vmem>>, vector<1x256xf32>,
    return
  }
  func.func @transform_0(%arg0: i32) -> (i32, i32) {
    %c0_i32 = arith.constant 0 : i32
    %c0_i32_0 = arith.constant 0 : i32
    return %c0_i32, %arg0 : i32, i32
  }
  func.func @transform_1(%arg0: i32) -> (i32, i32) {
    %c0_i32 = arith.constant 0 : i32
    %c0_i32_0 = arith.constant 0 : i32
    %c0_i32_1 = arith.constant 0 : i32
    return %c0_i32, %c0_i32_0 : i32, i32
  }
  func.func @transform_2(%arg0: i32) -> (i32, i32) {
    %c0_i32 = arith.constant 0 : i32
    %c0_i32_0 = arith.constant 0 : i32
    %c0_i32_1 = arith.constant 0 : i32
    return %c0_i32, %c0_i32_0 : i32, i32
  }
  func.func @transform_3(%arg0: i32) -> (i32, i32) {
    %c0_i32 = arith.constant 0 : i32
    %c0_i32_0 = arith.constant 0 : i32
    %c0_i32_1 = arith.constant 0 : i32
    return %c0_i32, %c0_i32_0 : i32, i32
  }
  func.func @transform_4(%arg0: i32) -> (i32, i32) {
    %c0_i32 = arith.constant 0 : i32
    %c0_i32_0 = arith.constant 0 : i32
    %c0_i32_1 = arith.constant 0 : i32
    return %c0_i32, %c0_i32_0 : i32, i32
  }
  func.func @transform_5(%arg0: i32) -> (i32, i32) {
    %c0_i32 = arith.constant 0 : i32
    %c0_i32_0 = arith.constant 0 : i32
    %c0_i32_1 = arith.constant 0 : i32
    return %c0_i32, %c0_i32_0 : i32, i32
  }
  func.func @transform_6(%arg0: i32) -> (i32, i32) {
    %c0_i32 = arith.constant 0 : i32
    %c0_i32_0 = arith.constant 0 : i32
    %c0_i32_1 = arith.constant 0 : i32
    return %c0_i32, %c0_i32_0 : i32, i32
  }
  func.func @transform_7(%arg0: i32) -> (i32, i32) {
    %c0_i32 = arith.constant 0 : i32
    %c0_i32_0 = arith.constant 0 : i32
    %c0_i32_1 = arith.constant 0 : i32
    return %c0_i32, %c0_i32_0 : i32, i32
  }
  func.func @transform_8(%arg0: i32) -> (i32, i32) {
    %c0_i32 = arith.constant 0 : i32
    %c0_i32_0 = arith.constant 0 : i32
    %c0_i32_1 = arith.constant 0 : i32
    return %c0_i32, %c0_i32_0 : i32, i32
  }
  func.func @transform_9(%arg0: i32) -> (i32, i32) {
    %c0_i32 = arith.constant 0 : i32
    %c0_i32_0 = arith.constant 0 : i32
    return %c0_i32, %arg0 : i32, i32
  }
}

</mosaic_0001>

<bundles_post_ra>
// kernel: nonlinear_forward.1
= control target key start
LH: loop header
LB: loop body
LE: loop exit
PB: predicated region body
PF: predicated region fallthrough
CT: control target
= control target key end

     0   :  { %v545_v0 = vmov 1   ;;  %v546_v1 = vmov 0   ;;  %v547_v13 = vmov 0.0   ;;  %v50_v19 = vlaneseq  ;;  %s709_s1 = inlined_call_operand.vmem [shape: f32[16,2], index: 1, kind: input, shape index: {}]   ;;  %s710_s8 = inlined_call_operand.<no memory space> [shape: f32[1,1], index: 8, kind: input, shape index: {}]   ;;  %s711_s2 = inlined_call_operand.vmem [shape: f32[16,1], index: 2, kind: input, shape index: {}]   ;;  %s712_s4 = inlined_call_operand.vmem [shape: f32[64,1], index: 4, kind: input, shape index: {}]   ;;  %s713_s6 = inlined_call_operand.vmem [shape: f32[8,1], index: 6, kind: input, shape index: {}]   ;;  %s714_s7 = inlined_call_operand.vmem [shape: f32[8,1], index: 7, kind: input, shape index: {}]   ;;  %s715_s0 = inlined_call_operand.vmem [shape: f32[2,256], index: 0, kind: input, shape index: {}]   ;;  %s716_s3 = inlined_call_operand.vmem [shape: f32[64,16], index: 3, kind: input, shape index: {}]   ;;  %s717_s5 = inlined_call_operand.vmem [shape: f32[8,64], index: 5, kind: input, shape index: {}]   ;;  %s718_s9 = inlined_call_operand.vmem [shape: f32[1,256], index: 9, kind: output, shape index: {}]  }
   0x1   :  { %543 = vset.pattern.permute.xlu1 %v545_v0  ;;  %542 = vset.pattern.permute.xlu0 %v546_v1  ;;  %v37_v2 = vld [vmem:[%s709_s1] sm:$0xff]  ;;  %v14_v3 = vstv %s710_s8  ;;  %v38_v4 = vld [vmem:[%s709_s1 + $0x8] sm:$0xff]  ;;  %v129_v9 = vld [vmem:[%s712_s4 + $0x10] sm:$0xff]  ;;  %vm175_vm4 = vcmask 130048  }
   0x2   :  { %65 = vperm.xlu1 %543, %v37_v2   ;;  %41 = vperm.xlu0 %542, %v37_v2   ;;  %15 = vst [vmem:[#allocation2] sm:$0x1] %v14_v3  ;;  %v91_v5 = vld [vmem:[%s711_s2] sm:$0xff]  ;;  %v92_v6 = vld [vmem:[%s711_s2 + $0x8] sm:$0xff]  ;;  %v130_v10 = vld [vmem:[%s712_s4 + $0x18] sm:$0xff]  ;;  %v647_v20 = vshrl.u32 %v50_v19, 7 }
   0x3   :  { %v127_v7 = vld [vmem:[%s712_s4] sm:$0xff]  ;;  %v128_v8 = vld [vmem:[%s712_s4 + $0x8] sm:$0xff]  ;;  %264 = vmatprep.mubr.f32.mxu0 %v547_v13  ;;  %436 = vmatprep.mubr.f32.mxu1 %v547_v13  ;;  %v133_v14 = vld [vmem:[%s712_s4 + $0x30] sm:$0xff] }
   0x4   :  { %v131_v11 = vld [vmem:[%s712_s4 + $0x20] sm:$0xff]  ;;  %v132_v12 = vld [vmem:[%s712_s4 + $0x28] sm:$0xff]  ;;  %v134_v15 = vld [vmem:[%s712_s4 + $0x38] sm:$0xff]  ;;  %v650_v21 = vsub.s32 0, %v647_v20  ;;  %v56_v22 = vsub.s32 1, %v647_v20 }
   0x5   :  { %v362_v16 = vld [vmem:[%s713_s6] sm:$0xff]  ;;  %v120_v62 = vld [vmem:[%s716_s3 + $0x8] sm:$0xff]  ;;  %v121_v63 = vld [vmem:[%s716_s3 + $0x10] sm:$0xff] }
   0x6   :  { %69 = vperm.xlu1 %543, %v38_v4   ;;  %46 = vperm.xlu0 %542, %v38_v4   ;;  %v449_v17 = vld [vmem:[%s714_s7] sm:$0xff]  ;;  %v122_v0 = vld [vmem:[%s716_s3 + $0x18] sm:$0xff]  ;;  %v124_v2 = vld [vmem:[%s716_s3 + $0x28] sm:$0xff] }
   0x7   :  { %v508_v23 = vld [vmem:[%s715_s0 + $0x1] ss:$2 sm:$0x3]  ;;  %v34_v24 = vld [vmem:[%s715_s0] ss:$2 sm:$0x3] }
   0x8   :  { %v76_v25 = vrot.slane %v508_v23, %v650_v21  ;;  %v80_v26 = vrot.slane %v508_v23, %v56_v22  ;;  %v53_v27 = vrot.slane %v34_v24, %v650_v21  ;;  %v57_v28 = vrot.slane %v34_v24, %v56_v22  ;;  %v119_v61 = vld [vmem:[%s716_s3] sm:$0xff]  ;;  %v125_v3 = vld [vmem:[%s716_s3 + $0x30] sm:$0xff]  ;;  %v126_v4 = vld [vmem:[%s716_s3 + $0x38] sm:$0xff] }
   0x9   :  { %v469_v18 = vld [vmem:[#allocation2] sm:$0x1] }
   0xa   :  { %544 = vset.pattern.permute.xlu1 %v546_v1  ;;  %95 = vperm.xlu0 %542, %v91_v5   ;;  %v123_v1 = vld [vmem:[%s716_s3 + $0x20] sm:$0xff] }
   0xb   :  { %100 = vperm.xlu1 %544, %v92_v6  }
   0xe   :  { %137 = vperm.xlu0 %542, %v127_v7  }
   0xf   :  { %142 = vperm.xlu1 %544, %v128_v8  }
  0x12   :  { %147 = vperm.xlu0 %542, %v129_v9  }
  0x13   :  { %152 = vperm.xlu1 %544, %v130_v10  }
  0x16   :  { %157 = vperm.xlu0 %542, %v131_v11  }
  0x17   :  { %162 = vperm.xlu1 %544, %v132_v12  }
  0x1a   :  { %167 = vperm.xlu0 %542, %v133_v14  }
  0x1b   :  { %172 = vperm.xlu1 %544, %v134_v15  }
  0x1e   :  { %365 = vperm.xlu0 %542, %v362_v16  }
  0x1f   :  { %452 = vperm.xlu1 %544, %v449_v17  }
  0x22   :  { %472 = vperm.xlu0 %542, %v469_v18  }
  0x81   :  { %v66_v29 = vpop.permute.xlu1 %65  ;;  %v42_v30 = vpop.permute.xlu0 %41 }
  0x82   :  { %v83_v31 = vmul.f32 %v76_v25, %v66_v29  ;;  %v84_v32 = vmul.f32 %v80_v26, %v66_v29  ;;  %v60_v33 = vmul.f32 %v53_v27, %v42_v30  ;;  %v61_v34 = vmul.f32 %v57_v28, %v42_v30 }
  0x84   :  { %v87_v41 = vadd.f32 %v83_v31, %v60_v33  ;;  %v88_v42 = vadd.f32 %v84_v32, %v61_v34 }
  0x85   :  { %v70_v35 = vpop.permute.xlu1 %69  ;;  %v47_v36 = vpop.permute.xlu0 %46 }
  0x86   :  { %v85_v37 = vmul.f32 %v76_v25, %v70_v35  ;;  %v86_v38 = vmul.f32 %v80_v26, %v70_v35  ;;  %v62_v39 = vmul.f32 %v53_v27, %v47_v36  ;;  %v63_v40 = vmul.f32 %v57_v28, %v47_v36 }
  0x88   :  { %v89_v43 = vadd.f32 %v85_v37, %v62_v39  ;;  %v90_v44 = vadd.f32 %v86_v38, %v63_v40 }
  0x89   :  { %v96_v45 = vpop.permute.xlu0 %95 }
  0x8a   :  { %v103_v46 = vadd.f32 %v96_v45, %v87_v41  ;;  %v104_v47 = vadd.f32 %v96_v45, %v88_v42  ;;  %v101_v48 = vpop.permute.xlu1 %100 }
  0x8b   :  { %v105_v49 = vadd.f32 %v101_v48, %v89_v43  ;;  %v106_v50 = vadd.f32 %v101_v48, %v90_v44 }
  0x8c   :  { %v111_v51 = vmul.f32 0.1, %v103_v46  ;;  %vm108_vm0 = vcmp.ge.f32.partialorder %v104_v47, 0.0  ;;  %v112_v52 = vmul.f32 0.1, %v104_v47  ;;  %vm107_vm1 = vcmp.ge.f32.partialorder %v103_v46, 0.0 }
  0x8d   :  { %v113_v53 = vmul.f32 0.1, %v105_v49  ;;  %vm110_vm2 = vcmp.ge.f32.partialorder %v106_v50, 0.0  ;;  %v114_v54 = vmul.f32 0.1, %v106_v50  ;;  %vm109_vm3 = vcmp.ge.f32.partialorder %v105_v49, 0.0  ;;  %v138_v5 = vpop.permute.xlu0 %137 }
  0x8e   :  { %v116_v55 = vsel %vm108_vm0, %v104_v47, %v112_v52  ;;  %v115_v56 = vsel %vm107_vm1, %v103_v46, %v111_v51  ;;  %v143_v10 = vpop.permute.xlu1 %142 }
  0x8f   :  { %v118_v57 = vsel %vm110_vm2, %v106_v50, %v114_v54  ;;  %v117_v58 = vsel %vm109_vm3, %v105_v49, %v113_v53 }
  0x90   :  { %v518_v59 = vpack.c.bf16 %v118_v57, %v116_v55  ;;  %v520_v60 = vpack.c.bf16 %v117_v58, %v115_v56 }
  0x91   :  { %v148_v18 = vpop.permute.xlu0 %147 }
  0x92   :  { %519 = vmatprep.subr.bf16.mxu0 %v518_v59  ;;  %v153_v33 = vpop.permute.xlu1 %152 }
  0x93   :  { %521 = vmatpush1.bf16.msra.mxu0 %v520_v60 }
  0x95   :  { %v158_v41 = vpop.permute.xlu0 %157 }
  0x96   :  { %509 = vmatmul.mubr.msk.f32.vlgmr.msra.gmra.mrb[0].mxu0 %vm175_vm4, %v119_v61  ;;  %v163_v53 = vpop.permute.xlu1 %162 }
  0x97   :  { %270 = vmatprep.mubr.f32.mxu0 %v547_v13 }
  0x99   :  { %v168_v61 = vpop.permute.xlu0 %167 }
  0x9a   :  { %510 = vmatmul.mubr.msk.f32.gmra.mrb[2].mxu0 %vm175_vm4, %v120_v62 }
  0x9b   :  { %276 = vmatprep.mubr.f32.mxu0 %v547_v13 }
  0x9e   :  { %511 = vmatmul.mubr.msk.f32.gmra.mrb[4].mxu0 %vm175_vm4, %v121_v63 }
  0x9f   :  { %282 = vmatprep.mubr.f32.mxu0 %v547_v13 }
  0xa2   :  { %512 = vmatmul.mubr.msk.f32.gmra.mrb[6].mxu0 %vm175_vm4, %v122_v0 }
  0xa3   :  { %288 = vmatprep.mubr.f32.mxu0 %v547_v13 }
  0xa6   :  { %513 = vmatmul.mubr.msk.f32.gmra.mrb[8].mxu0 %vm175_vm4, %v123_v1 }
  0xa7   :  { %294 = vmatprep.mubr.f32.mxu0 %v547_v13 }
  0xaa   :  { %514 = vmatmul.mubr.msk.f32.gmra.mrb[10].mxu0 %vm175_vm4, %v124_v2 }
  0xab   :  { %300 = vmatprep.mubr.f32.mxu0 %v547_v13 }
  0xae   :  { %515 = vmatmul.mubr.msk.f32.gmra.mrb[12].mxu0 %vm175_vm4, %v125_v3 }
  0xaf   :  { %306 = vmatprep.mubr.f32.mxu0 %v547_v13 }
  0xb2   :  { %516 = vmatmul.mubr.msk.f32.gmra.mrb[14].mxu0 %vm175_vm4, %v126_v4 }
 0x169   :  { %v266_v6 = vpop.f32.mrb[0].mxu0 }
 0x16a   :  { %v267_v7 = vadd.f32 %v266_v6, %v138_v5  ;;  %v268_v8 = vpop.f32.mrb[1].mxu0 }
 0x16b   :  { %v269_v9 = vadd.f32 %v268_v8, %v138_v5 }
 0x16c   :  { %v329_v12 = vmul.f32 0.2, %v267_v7  ;;  %vm313_vm5 = vcmp.ge.f32.partialorder %v267_v7, 0.0 }
 0x16d   :  { %v272_v11 = vpop.f32.mrb[2].mxu0  ;;  %v330_v16 = vmul.f32 0.2, %v269_v9  ;;  %vm314_vm6 = vcmp.ge.f32.partialorder %v269_v9, 0.0 }
 0x16e   :  { %v273_v14 = vadd.f32 %v272_v11, %v143_v10  ;;  %v274_v15 = vpop.f32.mrb[3].mxu0  ;;  %v345_v26 = vsel %vm313_vm5, %v267_v7, %v329_v12  ;;  %vm368_vm5 = vcmask 523264  }
 0x16f   :  { %v275_v17 = vadd.f32 %v274_v15, %v143_v10  ;;  %v346_v29 = vsel %vm314_vm6, %v269_v9, %v330_v16  ;;  %v173_v9 = vpop.permute.xlu1 %172 }
 0x170   :  { %v331_v13 = vmul.f32 0.2, %v273_v14  ;;  %vm315_vm7 = vcmp.ge.f32.partialorder %v273_v14, 0.0 }
 0x171   :  { %v332_v22 = vmul.f32 0.2, %v275_v17  ;;  %v278_v23 = vpop.f32.mrb[4].mxu0  ;;  %vm316_vm8 = vcmp.ge.f32.partialorder %v275_v17, 0.0 }
 0x172   :  { %v279_v24 = vadd.f32 %v278_v23, %v148_v18  ;;  %v280_v25 = vpop.f32.mrb[5].mxu0  ;;  %v347_v27 = vsel %vm315_vm7, %v273_v14, %v331_v13 }
 0x173   :  { %v281_v28 = vadd.f32 %v280_v25, %v148_v18  ;;  %v348_v30 = vsel %vm316_vm8, %v275_v17, %v332_v22  ;;  %v524_v31 = vpack.c.bf16 %v347_v27, %v345_v26  ;;  %v361_v27 = vld [vmem:[%s717_s5] sm:$0xff]  ;;  %vm501_vm8 = vcmp.lt.s32.totalorder %v50_v19, 256 }
 0x174   :  { %v522_v32 = vpack.c.bf16 %v348_v30, %v346_v29  ;;  %v333_v35 = vmul.f32 0.2, %v279_v24  ;;  %vm317_vm9 = vcmp.ge.f32.partialorder %v279_v24, 0.0 }
 0x175   :  { %v284_v34 = vpop.f32.mrb[6].mxu0  ;;  %v334_v38 = vmul.f32 0.2, %v281_v28  ;;  %vm318_vm10 = vcmp.ge.f32.partialorder %v281_v28, 0.0 }
 0x176   :  { %v285_v36 = vadd.f32 %v284_v34, %v153_v33  ;;  %v286_v37 = vpop.f32.mrb[7].mxu0  ;;  %523 = vmatprep.subr.bf16.mxu1 %v522_v32  ;;  %v349_v46 = vsel %vm317_vm9, %v279_v24, %v333_v35  ;;  %v453_v35 = vpop.permute.xlu1 %452 }
 0x177   :  { %v287_v39 = vadd.f32 %v286_v37, %v153_v33  ;;  %525 = vmatpush1.bf16.msra.mxu1 %v524_v31  ;;  %v350_v49 = vsel %vm318_vm10, %v281_v28, %v334_v38  ;;  %v366_v28 = vpop.permute.xlu0 %365 }
 0x178   :  { %vm319_vm11 = vcmp.ge.f32.partialorder %v285_v36, 0.0  ;;  %v335_v40 = vmul.f32 0.2, %v285_v36 }
 0x179   :  { %vm320_vm12 = vcmp.ge.f32.partialorder %v287_v39, 0.0  ;;  %v336_v42 = vmul.f32 0.2, %v287_v39  ;;  %v290_v43 = vpop.f32.mrb[8].mxu0 }
 0x17a   :  { %v291_v44 = vadd.f32 %v290_v43, %v158_v41  ;;  %v292_v45 = vpop.f32.mrb[9].mxu0  ;;  %v351_v47 = vsel %vm319_vm11, %v285_v36, %v335_v40 }
 0x17b   :  { %v293_v48 = vadd.f32 %v292_v45, %v158_v41  ;;  %v352_v50 = vsel %vm320_vm12, %v287_v39, %v336_v42  ;;  %v528_v51 = vpack.c.bf16 %v351_v47, %v349_v46  ;;  %v548_v45 = vmov 1966171168  }
 0x17c   :  { %v526_v52 = vpack.c.bf16 %v352_v50, %v350_v49  ;;  %v337_v55 = vmul.f32 0.2, %v291_v44  ;;  %vm321_vm13 = vcmp.ge.f32.partialorder %v291_v44, 0.0  ;;  %v485_v46 = vunpack.c.l.s4 %v548_v45  ;;  %v473_v49 = vpop.permute.xlu0 %472 }
 0x17d   :  { %v296_v54 = vpop.f32.mrb[10].mxu0  ;;  %v338_v58 = vmul.f32 0.2, %v293_v48  ;;  %vm322_vm14 = vcmp.ge.f32.partialorder %v293_v48, 0.0 }
 0x17e   :  { %v297_v56 = vadd.f32 %v296_v54, %v163_v53  ;;  %v298_v57 = vpop.f32.mrb[11].mxu0  ;;  %527 = vmatprep.subr.bf16.mxu1 %v526_v52  ;;  %v353_v2 = vsel %vm321_vm13, %v291_v44, %v337_v55  ;;  %v486_v52 = vunpack.c.0.s8 %v485_v46  ;;  %v478_v54 = vrot.slane %v473_v49, %v650_v21 }
 0x17f   :  { %v299_v59 = vadd.f32 %v298_v57, %v163_v53  ;;  %529 = vmatpush1.bf16.msra.mxu1 %v528_v51  ;;  %v354_v5 = vsel %vm322_vm14, %v293_v48, %v338_v58 }
 0x180   :  { %vm323_vm15 = vcmp.ge.f32.partialorder %v297_v56, 0.0  ;;  %v339_v60 = vmul.f32 0.2, %v297_v56  ;;  %v489_v58 = vsub.s32 %v486_v52, %v647_v20 }
 0x181   :  { %vm324_vm0 = vcmp.ge.f32.partialorder %v299_v59, 0.0  ;;  %v340_v62 = vmul.f32 0.2, %v299_v59  ;;  %v302_v63 = vpop.f32.mrb[12].mxu0 }
 0x182   :  { %v303_v0 = vadd.f32 %v302_v63, %v168_v61  ;;  %v304_v1 = vpop.f32.mrb[13].mxu0  ;;  %v355_v3 = vsel %vm323_vm15, %v297_v56, %v339_v60 }
 0x183   :  { %v305_v4 = vadd.f32 %v304_v1, %v168_v61  ;;  %v356_v6 = vsel %vm324_vm0, %v299_v59, %v340_v62  ;;  %v532_v7 = vpack.c.bf16 %v355_v3, %v353_v2 }
 0x184   :  { %v530_v8 = vpack.c.bf16 %v356_v6, %v354_v5  ;;  %v341_v11 = vmul.f32 0.2, %v303_v0  ;;  %vm325_vm1 = vcmp.ge.f32.partialorder %v303_v0, 0.0 }
 0x185   :  { %v308_v10 = vpop.f32.mrb[14].mxu0  ;;  %v342_v15 = vmul.f32 0.2, %v305_v4  ;;  %vm326_vm2 = vcmp.ge.f32.partialorder %v305_v4, 0.0 }
 0x186   :  { %v309_v12 = vadd.f32 %v308_v10, %v173_v9  ;;  %v310_v14 = vpop.f32.mrb[15].mxu0  ;;  %531 = vmatprep.subr.bf16.mxu1 %v530_v8  ;;  %v357_v18 = vsel %vm325_vm1, %v303_v0, %v341_v11 }
 0x187   :  { %v311_v16 = vadd.f32 %v310_v14, %v173_v9  ;;  %533 = vmatpush1.bf16.msra.mxu1 %v532_v7  ;;  %v358_v23 = vsel %vm326_vm2, %v305_v4, %v342_v15 }
 0x188   :  { %vm327_vm3 = vcmp.ge.f32.partialorder %v309_v12, 0.0  ;;  %v343_v17 = vmul.f32 0.2, %v309_v12 }
 0x189   :  { %vm328_vm4 = vcmp.ge.f32.partialorder %v311_v16, 0.0  ;;  %v344_v13 = vmul.f32 0.2, %v311_v16 }
 0x18a   :  { %v359_v22 = vsel %vm327_vm3, %v309_v12, %v343_v17 }
 0x18b   :  { %v360_v24 = vsel %vm328_vm4, %v311_v16, %v344_v13  ;;  %v536_v25 = vpack.c.bf16 %v359_v22, %v357_v18 }
 0x18c   :  { %v534_v26 = vpack.c.bf16 %v360_v24, %v358_v23 }
 0x18e   :  { %535 = vmatprep.subr.bf16.mxu1 %v534_v26 }
 0x18f   :  { %537 = vmatpush1.bf16.msra.mxu1 %v536_v25 }
 0x192   :  { %517 = vmatmul.mubr.msk.f32.vlgmr.msra.gmra.mrb[0].mxu1 %vm368_vm5, %v361_v27 }
 0x265   :  { %v438_v29 = vpop.f32.mrb[0].mxu1 }
 0x266   :  { %v439_v30 = vadd.f32 %v438_v29, %v366_v28  ;;  %v440_v31 = vpop.f32.mrb[1].mxu1 }
 0x267   :  { %v441_v32 = vadd.f32 %v440_v31, %v366_v28 }
 0x268   :  { %vm443_vm6 = vcmp.ge.f32.partialorder %v439_v30, 0.0  ;;  %v445_v33 = vmul.f32 0.1, %v439_v30 }
 0x269   :  { %vm444_vm7 = vcmp.ge.f32.partialorder %v441_v32, 0.0  ;;  %v446_v34 = vmul.f32 0.1, %v441_v32 }
 0x26a   :  { %v447_v36 = vsel %vm443_vm6, %v439_v30, %v445_v33 }
 0x26b   :  { %v455_v37 = vmul.f32 %v453_v35, %v447_v36  ;;  %v448_v38 = vsel %vm444_vm7, %v441_v32, %v446_v34 }
 0x26c   :  { %v456_v39 = vmul.f32 %v453_v35, %v448_v38 }
 0x26d   :  { %v457_v40 = vrot.slane %v455_v37, 4 }
 0x26e   :  { %v463_v41 = vrot.slane %v456_v39, 4 }
 0x26f   :  { %v458_v42 = vadd.f32 %v457_v40, %v455_v37 }
 0x270   :  { %v464_v43 = vadd.f32 %v463_v41, %v456_v39 }
 0x271   :  { %v459_v44 = vrot.slane %v458_v42, 2 }
 0x272   :  { %v465_v47 = vrot.slane %v464_v43, 2 }
 0x273   :  { %v460_v48 = vadd.f32 %v459_v44, %v458_v42 }
 0x274   :  { %v466_v50 = vadd.f32 %v465_v47, %v464_v43 }
 0x275   :  { %v461_v51 = vrot.slane %v460_v48, 1 }
 0x276   :  { %v467_v53 = vrot.slane %v466_v50, 1 }
 0x277   :  { %v462_v55 = vadd.f32 %v461_v51, %v460_v48 }
 0x278   :  { %v468_v56 = vadd.f32 %v467_v53, %v466_v50 }
 0x279   :  { %v479_v57 = vadd.f32 %v478_v54, %v462_v55 }
 0x27a   :  { %v480_v59 = vadd.f32 %v478_v54, %v468_v56 }
 0x27c   :  { %v483_v60 = vcombine.low %v479_v57, %v480_v59 }
 0x27e   :  { %v490_v61 = vrot.slane %v483_v60, %v489_v58 }
 0x280   :  { %v497_v62 = vrot.slane %v490_v61, %v489_v58 }
 0x282   :  { %503 = vst.msk [vmem:[%s718_s9] sm:$0x3] %vm501_vm8, %v497_v62 }

</bundles_post_ra>
